<compile_context>
chip_gen: v5e
topology: v5e:2x2
jax: 0.10.0
libtpu: 0.0.40
codegen_flags: <defaults>
</compile_context>

<pallas_src>
import jax
import jax.numpy as jnp
import numpy as np
from jax.experimental import pallas as pl
from jax.experimental.pallas import tpu as pltpu

NEG_SLOPE = 0.01   # nn.LeakyReLU default negative_slope
L1_EPS = 1e-12     # F.normalize default eps
BN_EPS = 1e-5      # nn.BatchNorm2d default eps


def _sem_point_update_kernel(ed_ref, ei_ref, p_ref, w1a_ref, w1b_ref, b1_ref,
                             w2_ref, b2_ref, o_ref):
    # One grid step == TB batch elements x TM edge rows.
    TB, TM, N = ed_ref.shape
    C = w2_ref.shape[1]

    # Off-diagonal mask for this row tile (rows offset by the row-tile index).
    row0 = pl.program_id(1) * TM
    row = jax.lax.broadcasted_iota(jnp.int32, (TM, N), 0) + row0
    col = jax.lax.broadcasted_iota(jnp.int32, (TM, N), 1)
    off_diag = row != col                                     # (TM, N) bool
    ezero = jnp.zeros((), ed_ref.dtype)

    h_parts = []
    for b in range(TB):                                       # static unroll, TB small
        p_b = p_ref[b]                                        # (N, D)
        ed_b = jnp.where(off_diag, ed_ref[b], ezero)          # (TM, N)
        ei_b = jnp.where(off_diag, ei_ref[b], ezero)          # (TM, N)

        # Stack ed/ei along the sublane axis -> ONE MXU matmul (one RHS push
        # of p_b) per batch element instead of two.
        stacked = jnp.concatenate([ed_b, ei_b], axis=0)       # (2*TM, N)

        # Exact L1 denominators in f32, applied AFTER the matmul
        # (removes 2*N^2 divides; exact F.normalize semantics).
        inv = 1.0 / jnp.maximum(
            jnp.sum(jnp.abs(stacked.astype(jnp.float32)), axis=-1, keepdims=True),
            L1_EPS)                                           # (2*TM, 1)

        # bmm(edge, point_node): f32 accumulation on the MXU.
        aggr = jnp.dot(stacked, p_b, preferred_element_type=jnp.float32) * inv

        # Concat-free first conv layer: W1 pre-split into its two D-row
        # halves; consume the narrow (TM, D) slabs immediately so only the
        # wider (TB*TM, C2) hidden slab is carried across batch elements.
        h_b = (jnp.dot(aggr[:TM], w1a_ref[...], preferred_element_type=jnp.float32)
               + jnp.dot(aggr[TM:], w1b_ref[...], preferred_element_type=jnp.float32))
        h_parts.append(h_b)                                   # (TM, C2)

    h = h_parts[0] if TB == 1 else jnp.concatenate(h_parts, axis=0)   # (TB*TM, C2)
    h = h + b1_ref[...]
    h = jnp.where(h >= 0, h, NEG_SLOPE * h)                   # LeakyReLU
    y = jnp.dot(h, w2_ref[...], preferred_element_type=jnp.float32) + b2_ref[...]
    y = jnp.where(y >= 0, y, NEG_SLOPE * y)                   # LeakyReLU

    # Single reshaped store (no per-batch sublane-sliced stores).
    o_ref[...] = y.astype(o_ref.dtype).reshape(TB, TM, C)


def _round_up(x, m):
    return ((x + m - 1) // m) * m


def _cdiv(a, b):
    return -(-a // b)


def _vmem_budget_bytes():
    """Generation-aware (physical-VMEM-aware) budgets.

    Returns (tile_budget_bytes, vmem_limit_bytes):
      * tile budget ~= physical/2 (used to pick TB/TM, leaves headroom),
      * explicit scoped VMEM limit ~= 3/4 physical (~96 MiB v5e/v6e, ~48 MiB v7x).
    """
    try:
        physical = int(pltpu.get_tpu_info().vmem_capacity_bytes)
    except Exception:
        physical = 64 * 1024 * 1024        # conservative fallback (v7x per-TC)
    return physical // 2, (3 * physical) // 4


def _pick_tiles(B, N, D, C2, C, edge_itemsize, node_itemsize, budget_bytes):
    """Choose (TB, TM) so the pipelined working set stays within budget."""
    f32 = 4
    weight_bytes = (2 * D * C2 + C2 + C2 * C + C) * f32   # single-buffered weights

    def vmem_estimate(tb, tm):
        edges = 2 * tb * tm * N * edge_itemsize            # distribution + instance tiles
        nodes = tb * N * D * node_itemsize                 # point_node tile
        out = tb * tm * C * f32                            # output tile
        interm = 2 * tb * 2 * tm * max(D, C2) * f32        # in-kernel aggr / h slabs
        # Edge/node/output blocks are double-buffered by the pipeline; weights
        # are single-buffered (pl.Buffered(1)); +2 MiB headroom for compiler
        # internal scratch and the double-buffered-weight fallback path.
        return 2 * (edges + nodes + out) + weight_bytes + interm + (2 << 20)

    # Row tile: full N if it fits, otherwise the largest multiple-of-8 tile
    # that fits.  The grid uses cdiv, so TM need not divide N: the tail block
    # computes on padded rows that the masked output store discards.
    tm = N
    if vmem_estimate(1, tm) > budget_bytes:
        tm = 8
        for cand in (8192, 4096, 2048, 1024, 512, 256, 128, 64, 32, 16, 8):
            if cand < N and vmem_estimate(1, cand) <= budget_bytes:
                tm = cand
                break

    # Batch tile: pack batch elements only when one step covers the full row
    # range (amortizes ~0.35us/step overhead at small N) AND the grid keeps
    # >=2 steps along a parallel axis so both v7x TensorCores get work.
    tb = 1
    if tm == N and N % 8 == 0:
        for cand in (8, 4, 2):
            if B % cand == 0 and B // cand >= 2 and vmem_estimate(cand, tm) <= budget_bytes:
                tb = cand
                break

    # If the whole problem would be a single grid step, split the row axis so
    # v7x's second TensorCore is not idle.
    if B // tb == 1 and _cdiv(N, tm) == 1 and N > 8:
        tm = min(tm, _round_up(_cdiv(N, 2), 8))

    return tb, tm


def sem_point_update(distribution_edge, instance_edge, point_node,
                     w1_eff, b1_eff, w2_eff, b2_eff, *,
                     edge_dtype=None, node_dtype=None,
                     single_buffer_weights=True):
    B, N, D = point_node.shape
    C2 = w1_eff.shape[1]
    C = w2_eff.shape[1]
    assert w1_eff.shape[0] == 2 * D
    out_dtype = point_node.dtype

    # Cast at the call boundary: the HBM->VMEM DMA then moves half the bytes
    # for the dominant (B, N, N) edge streams (mem-bound kernel).  Rowsums /
    # reciprocals / MXU accumulation stay f32 inside the kernel.
    if edge_dtype is not None:
        distribution_edge = distribution_edge.astype(edge_dtype)
        instance_edge = instance_edge.astype(edge_dtype)
    if node_dtype is not None:
        point_node = point_node.astype(node_dtype)

    # Split the folded conv1 weight into its two D-row halves (kills the
    # lane-axis concat inside the kernel).
    w1a = w1_eff[:D]
    w1b = w1_eff[D:]

    budget, vmem_limit = _vmem_budget_bytes()
    TB, TM = _pick_tiles(
        B, N, D, C2, C,
        edge_itemsize=np.dtype(distribution_edge.dtype).itemsize,
        node_itemsize=np.dtype(point_node.dtype).itemsize,
        budget_bytes=budget)
    grid = (B // TB, _cdiv(N, TM))

    def build(weight_mode):
        wkw = {} if weight_mode is None else {"pipeline_mode": weight_mode}

        def w_spec(shape):
            return pl.BlockSpec(shape, lambda b, m: (0, 0), **wkw)

        return pl.pallas_call(
            _sem_point_update_kernel,
            out_shape=jax.ShapeDtypeStruct((B, N, C), out_dtype),
            grid_spec=pltpu.PrefetchScalarGridSpec(
                num_scalar_prefetch=0,
                grid=grid,
                in_specs=[
                    pl.BlockSpec((TB, TM, N), lambda b, m: (b, m, 0)),   # distribution_edge
                    pl.BlockSpec((TB, TM, N), lambda b, m: (b, m, 0)),   # instance_edge
                    pl.BlockSpec((TB, N, D), lambda b, m: (b, 0, 0)),    # point_node
                    w_spec((D, C2)),                                     # W1 top half
                    w_spec((D, C2)),                                     # W1 bottom half
                    w_spec((1, C2)),                                     # folded conv1 bias
                    w_spec((C2, C)),                                     # folded conv2 weight
                    w_spec((1, C)),                                      # folded conv2 bias
                ],
                out_specs=pl.BlockSpec((TB, TM, C), lambda b, m: (b, m, 0)),
            ),
            compiler_params=pltpu.CompilerParams(
                dimension_semantics=("parallel", "parallel"),
                vmem_limit_bytes=int(vmem_limit)),
        )

    args = (distribution_edge, instance_edge, point_node,
            w1a, w1b, b1_eff, w2_eff, b2_eff)

    if single_buffer_weights:
        # Constant-index-map weight blocks don't need double buffering; fall
        # back to default buffering if this JAX build rejects pipeline_mode.
        try:
            return build(pl.Buffered(buffer_count=1))(*args)
        except Exception:
            pass
    return build(None)(*args)


def make_params(key, in_c, base_c):
    """Deterministic parameter init (shapes from SemPointUpdate.__init__)."""
    c2 = base_c * 2
    ks = jax.random.split(key, 8)
    # Conv2d weights are (out, in, 1, 1) in PyTorch; store transposed (in, out).
    w1 = jax.random.normal(ks[0], (in_c, c2), jnp.float32) * 0.1
    w2 = jax.random.normal(ks[1], (c2, base_c), jnp.float32) * 0.1
    # BatchNorm2d params / running stats (inference semantics).
    g1 = 1.0 + 0.1 * jax.random.normal(ks[2], (c2,), jnp.float32)
    b1 = 0.1 * jax.random.normal(ks[3], (c2,), jnp.float32)
    m1 = 0.05 * jax.random.normal(ks[4], (c2,), jnp.float32)
    v1 = jnp.abs(jax.random.normal(ks[5], (c2,), jnp.float32)) + 0.5
    g2 = 1.0 + 0.1 * jax.random.normal(ks[6], (base_c,), jnp.float32)
    b2 = 0.1 * jax.random.normal(ks[7], (base_c,), jnp.float32)
    m2 = jnp.zeros((base_c,), jnp.float32)
    v2 = jnp.ones((base_c,), jnp.float32)

    # Fold BN (eval mode) into the 1x1 conv: y = (x@W)*s + (beta - mean*s)
    s1 = g1 / jnp.sqrt(v1 + BN_EPS)
    s2 = g2 / jnp.sqrt(v2 + BN_EPS)
    w1_eff = w1 * s1[None, :]
    b1_eff = (b1 - m1 * s1)[None, :]          # (1, c2)
    w2_eff = w2 * s2[None, :]
    b2_eff = (b2 - m2 * s2)[None, :]          # (1, base_c)
    return w1_eff, b1_eff, w2_eff, b2_eff


def reference(distribution_edge, instance_edge, point_node,
              w1_eff, b1_eff, w2_eff, b2_eff):
    """Pure-JAX reference mirroring the PyTorch forward."""
    B, N, D = point_node.shape
    mask = 1.0 - jnp.eye(N, dtype=point_node.dtype)[None]

    def l1_norm(e):
        e = e * mask
        return e / jnp.maximum(jnp.sum(jnp.abs(e), axis=-1, keepdims=True), L1_EPS)

    a1 = jnp.einsum("bij,bjd->bid", l1_norm(distribution_edge), point_node)
    a2 = jnp.einsum("bij,bjd->bid", l1_norm(instance_edge), point_node)
    x = jnp.concatenate([a1, a2], axis=-1)                     # (B, N, 2D)
    h = x @ w1_eff + b1_eff
    h = jnp.where(h >= 0, h, NEG_SLOPE * h)
    y = h @ w2_eff + b2_eff
    return jnp.where(y >= 0, y, NEG_SLOPE * y)


if __name__ == "__main__":
    B, N, D = 2, 8, 16          # point_node: (B, N, D)
    in_c = 2 * D                # conv stack input channels = 2*D
    base_c = 8

    key = jax.random.PRNGKey(0)
    k_ed, k_ei, k_p, k_w = jax.random.split(key, 4)
    distribution_edge = jax.random.uniform(k_ed, (B, N, N), jnp.float32)
    instance_edge = jax.random.uniform(k_ei, (B, N, N), jnp.float32)
    point_node = jax.random.normal(k_p, (B, N, D), jnp.float32)

    w1_eff, b1_eff, w2_eff, b2_eff = make_params(k_w, in_c, base_c)

    ref = reference(distribution_edge, instance_edge, point_node,
                    w1_eff, b1_eff, w2_eff, b2_eff)

    # f32 path: exact semantics, tight tolerance.
    out = sem_point_update(distribution_edge, instance_edge, point_node,
                           w1_eff, b1_eff, w2_eff, b2_eff)
    out = jax.block_until_ready(out)
    np.testing.assert_allclose(np.asarray(out), np.asarray(ref),
                               rtol=1e-5, atol=1e-5)
    assert out.shape == (B, N, base_c)

    # bf16-edge path: halves HBM edge traffic (the dominant stream); edge
    # values are bf16-rounded at the boundary so compare at a looser tolerance.
    out_bf16 = sem_point_update(distribution_edge, instance_edge, point_node,
                                w1_eff, b1_eff, w2_eff, b2_eff,
                                edge_dtype=jnp.bfloat16)
    out_bf16 = jax.block_until_ready(out_bf16)
    np.testing.assert_allclose(np.asarray(out_bf16), np.asarray(ref),
                               rtol=3e-2, atol=3e-2)

    print("KERNEL_OK")
</pallas_src>

<mosaic_0001>
module attributes {stable_mosaic.version = 11 : i64} {
  func.func @_sem_point_update_kernel(%arg0: i32, %arg1: i32, %arg2: memref<1x8x8xf32, #tpu.memory_space<vmem>>, %arg3: memref<1x8x8xf32, #tpu.memory_space<vmem>>, %arg4: memref<1x8x16xf32, #tpu.memory_space<vmem>>, %arg5: memref<16x16xf32, #tpu.memory_space<vmem>>, %arg6: memref<16x16xf32, #tpu.memory_space<vmem>>, %arg7: memref<1x16xf32, #tpu.memory_space<vmem>>, %arg8: memref<16x8xf32, #tpu.memory_space<vmem>>, %arg9: memref<1x8xf32, #tpu.memory_space<vmem>>, %arg10: memref<1x8x8xf32, #tpu.memory_space<vmem>>) attributes {dimension_semantics = [#tpu.dimension_semantics<parallel>, #tpu.dimension_semantics<parallel>], iteration_bounds = array<i64: 2, 1>, scalar_prefetch = 0 : i64, scratch_operands = 0 : i64, tpu.core_type = #tpu.core_type<tc>, window_params = [{transform_indices = @transform_0, window_bounds = array<i64: 1, 8, 8>}, {transform_indices = @transform_1, window_bounds = array<i64: 1, 8, 8>}, {transform_indices = @transform_2, window_bounds = array<i64: 1, 8, 16>}, {pipeline_mode = #tpu.pipeline_mode<synchronous>, transform_indices = @transform_3, window_bounds = array<i64: 16, 16>}, {pipeline_mode = #tpu.pipeline_mode<synchronous>, transform_indices = @transform_4, window_bounds = array<i64: 16, 16>}, {pipeline_mode = #tpu.pipeline_mode<synchronous>, transform_indices = @transform_5, window_bounds = array<i64: 1, 16>}, {pipeline_mode = #tpu.pipeline_mode<synchronous>, transform_indices = @transform_6, window_bounds = array<i64: 16, 8>}, {pipeline_mode = #tpu.pipeline_mode<synchronous>, transform_indices = @transform_7, window_bounds = array<i64: 1, 8>}, {transform_indices = @transform_8, window_bounds = array<i64: 1, 8, 8>}]} {
    %c8_i32 = arith.constant 8 : i32
    %0 = arith.muli %arg1, %c8_i32 : i32
    %1 = tpu.iota {dimensions = array<i32: 0>} : vector<8x8xi32>
    %2 = vector.broadcast %0 : i32 to vector<8x8xi32>
    %3 = arith.addi %1, %2 : vector<8x8xi32>
    %4 = tpu.iota {dimensions = array<i32: 1>} : vector<8x8xi32>
    %5 = arith.cmpi ne, %3, %4 : vector<8x8xi32>
    %c0 = arith.constant 0 : index
    %c0_0 = arith.constant 0 : index
    %c0_1 = arith.constant 0 : index
    %6 = vector.load %arg4[%c0, %c0_0, %c0_1] : memref<1x8x16xf32, #tpu.memory_space<vmem>>, vector<1x8x16xf32>
    %7 = vector.shape_cast %6 : vector<1x8x16xf32> to vector<8x16xf32>
    %c0_2 = arith.constant 0 : index
    %c0_3 = arith.constant 0 : index
    %c0_4 = arith.constant 0 : index
    %8 = vector.load %arg2[%c0_2, %c0_3, %c0_4] : memref<1x8x8xf32, #tpu.memory_space<vmem>>, vector<1x8x8xf32>
    %9 = vector.shape_cast %8 : vector<1x8x8xf32> to vector<8x8xf32>
    %cst = arith.constant 0.000000e+00 : f32
    %10 = vector.broadcast %cst : f32 to vector<8x8xf32>
    %11 = arith.select %5, %9, %10 : vector<8x8xi1>, vector<8x8xf32>
    %c0_5 = arith.constant 0 : index
    %c0_6 = arith.constant 0 : index
    %c0_7 = arith.constant 0 : index
    %12 = vector.load %arg3[%c0_5, %c0_6, %c0_7] : memref<1x8x8xf32, #tpu.memory_space<vmem>>, vector<1x8x8xf32>
    %13 = vector.shape_cast %12 : vector<1x8x8xf32> to vector<8x8xf32>
    %cst_8 = arith.constant 0.000000e+00 : f32
    %14 = vector.broadcast %cst_8 : f32 to vector<8x8xf32>
    %15 = arith.select %5, %13, %14 : vector<8x8xi1>, vector<8x8xf32>
    %16 = tpu.concatenate %11, %15 in 0 : vector<8x8xf32>, vector<8x8xf32> -> vector<16x8xf32>
    %17 = math.absf %16 : vector<16x8xf32>
    %cst_9 = arith.constant dense<0.000000e+00> : vector<16xf32>
    %18 = vector.multi_reduction <add>, %17, %cst_9 [1] : vector<16x8xf32> to vector<16xf32>
    %19 = vector.shape_cast %18 : vector<16xf32> to vector<16x1xf32>
    %cst_10 = arith.constant 9.99999996E-13 : f32
    %20 = vector.broadcast %cst_10 : f32 to vector<16x1xf32>
    %21 = arith.maximumf %19, %20 : vector<16x1xf32>
    %cst_11 = arith.constant 1.000000e+00 : f32
    %22 = vector.broadcast %cst_11 : f32 to vector<16x1xf32>
    %23 = arith.divf %22, %21 : vector<16x1xf32>
    %cst_12 = arith.constant dense<0.000000e+00> : vector<16x16xf32>
    %24 = tpu.matmul %16, %7, %cst_12 {dimension_numbers = #tpu.dot_dimension_numbers<[1], [0], [0], [1], [0, 0, 1, 1], [], []>} : vector<16x8xf32>, vector<8x16xf32>, vector<16x16xf32> -> vector<16x16xf32>
    %25 = vector.broadcast %23 : vector<16x1xf32> to vector<16x16xf32>
    %26 = arith.mulf %24, %25 : vector<16x16xf32>
    %27 = vector.extract_strided_slice %26 {offsets = [0, 0], sizes = [8, 16], strides = [1, 1]} : vector<16x16xf32> to vector<8x16xf32>
    %c0_13 = arith.constant 0 : index
    %c0_14 = arith.constant 0 : index
    %28 = vector.load %arg5[%c0_13, %c0_14] : memref<16x16xf32, #tpu.memory_space<vmem>>, vector<16x16xf32>
    %cst_15 = arith.constant dense<0.000000e+00> : vector<8x16xf32>
    %29 = tpu.matmul %27, %28, %cst_15 {dimension_numbers = #tpu.dot_dimension_numbers<[1], [0], [0], [1], [0, 0, 1, 1], [], []>} : vector<8x16xf32>, vector<16x16xf32>, vector<8x16xf32> -> vector<8x16xf32>
    %30 = vector.extract_strided_slice %26 {offsets = [8, 0], sizes = [8, 16], strides = [1, 1]} : vector<16x16xf32> to vector<8x16xf32>
    %c0_16 = arith.constant 0 : index
    %c0_17 = arith.constant 0 : index
    %31 = vector.load %arg6[%c0_16, %c0_17] : memref<16x16xf32, #tpu.memory_space<vmem>>, vector<16x16xf32>
    %cst_18 = arith.constant dense<0.000000e+00> : vector<8x16xf32>
    %32 = tpu.matmul %30, %31, %cst_18 {dimension_numbers = #tpu.dot_dimension_numbers<[1], [0], [0], [1], [0, 0, 1, 1], [], []>} : vector<8x16xf32>, vector<16x16xf32>, vector<8x16xf32> -> vector<8x16xf32>
    %33 = arith.addf %29, %32 : vector<8x16xf32>
    %c0_19 = arith.constant 0 : index
    %c0_20 = arith.constant 0 : index
    %34 = vector.load %arg7[%c0_19, %c0_20] : memref<1x16xf32, #tpu.memory_space<vmem>>, vector<1x16xf32>
    %35 = vector.broadcast %34 : vector<1x16xf32> to vector<8x16xf32>
    %36 = arith.addf %33, %35 : vector<8x16xf32>
    %cst_21 = arith.constant 0.000000e+00 : f32
    %37 = vector.broadcast %cst_21 : f32 to vector<8x16xf32>
    %38 = arith.cmpf oge, %36, %37 : vector<8x16xf32>
    %cst_22 = arith.constant 0.00999999977 : f32
    %39 = vector.broadcast %cst_22 : f32 to vector<8x16xf32>
    %40 = arith.mulf %39, %36 : vector<8x16xf32>
    %41 = arith.select %38, %36, %40 : vector<8x16xi1>, vector<8x16xf32>
    %c0_23 = arith.constant 0 : index
    %c0_24 = arith.constant 0 : index
    %42 = vector.load %arg8[%c0_23, %c0_24] : memref<16x8xf32, #tpu.memory_space<vmem>>, vector<16x8xf32>
    %cst_25 = arith.constant dense<0.000000e+00> : vector<8x8xf32>
    %43 = tpu.matmul %41, %42, %cst_25 {dimension_numbers = #tpu.dot_dimension_numbers<[1], [0], [0], [1], [0, 0, 1, 1], [], []>} : vector<8x16xf32>, vector<16x8xf32>, vector<8x8xf32> -> vector<8x8xf32>
    %c0_26 = arith.constant 0 : index
    %c0_27 = arith.constant 0 : index
    %44 = vector.load %arg9[%c0_26, %c0_27] : memref<1x8xf32, #tpu.memory_space<vmem>>, vector<1x8xf32>
    %45 = vector.broadcast %44 : vector<1x8xf32> to vector<8x8xf32>
    %46 = arith.addf %43, %45 : vector<8x8xf32>
    %cst_28 = arith.constant 0.000000e+00 : f32
    %47 = vector.broadcast %cst_28 : f32 to vector<8x8xf32>
    %48 = arith.cmpf oge, %46, %47 : vector<8x8xf32>
    %cst_29 = arith.constant 0.00999999977 : f32
    %49 = vector.broadcast %cst_29 : f32 to vector<8x8xf32>
    %50 = arith.mulf %49, %46 : vector<8x8xf32>
    %51 = arith.select %48, %46, %50 : vector<8x8xi1>, vector<8x8xf32>
    %52 = vector.shape_cast %51 : vector<8x8xf32> to vector<1x8x8xf32>
    %c0_30 = arith.constant 0 : index
    %c0_31 = arith.constant 0 : index
    %c0_32 = arith.constant 0 : index
    %53 = vector.load %arg10[%c0_30, %c0_31, %c0_32] : memref<1x8x8xf32, #tpu.memory_space<vmem>>, vector<1x8x8xf32>
    tpu.vector_store %arg10[%c0_30, %c0_31, %c0_32], %52 {strides = array<i32>} : memref<1x8x8xf32, #tpu.memory_space<vmem>>, vector<1x8x8xf32>,
    return
  }
  func.func @transform_0(%arg0: i32, %arg1: i32) -> (i32, i32, i32) {
    %c0_i32 = arith.constant 0 : i32
    %c0_i32_0 = arith.constant 0 : i32
    return %arg0, %arg1, %c0_i32 : i32, i32, i32
  }
  func.func @transform_1(%arg0: i32, %arg1: i32) -> (i32, i32, i32) {
    %c0_i32 = arith.constant 0 : i32
    %c0_i32_0 = arith.constant 0 : i32
    return %arg0, %arg1, %c0_i32 : i32, i32, i32
  }
  func.func @transform_2(%arg0: i32, %arg1: i32) -> (i32, i32, i32) {
    %c0_i32 = arith.constant 0 : i32
    %c0_i32_0 = arith.constant 0 : i32
    %c0_i32_1 = arith.constant 0 : i32
    return %arg0, %c0_i32, %c0_i32_0 : i32, i32, i32
  }
  func.func @transform_3(%arg0: i32, %arg1: i32) -> (i32, i32) {
    %c0_i32 = arith.constant 0 : i32
    %c0_i32_0 = arith.constant 0 : i32
    %c0_i32_1 = arith.constant 0 : i32
    return %c0_i32, %c0_i32_0 : i32, i32
  }
  func.func @transform_4(%arg0: i32, %arg1: i32) -> (i32, i32) {
    %c0_i32 = arith.constant 0 : i32
    %c0_i32_0 = arith.constant 0 : i32
    %c0_i32_1 = arith.constant 0 : i32
    return %c0_i32, %c0_i32_0 : i32, i32
  }
  func.func @transform_5(%arg0: i32, %arg1: i32) -> (i32, i32) {
    %c0_i32 = arith.constant 0 : i32
    %c0_i32_0 = arith.constant 0 : i32
    %c0_i32_1 = arith.constant 0 : i32
    return %c0_i32, %c0_i32_0 : i32, i32
  }
  func.func @transform_6(%arg0: i32, %arg1: i32) -> (i32, i32) {
    %c0_i32 = arith.constant 0 : i32
    %c0_i32_0 = arith.constant 0 : i32
    %c0_i32_1 = arith.constant 0 : i32
    return %c0_i32, %c0_i32_0 : i32, i32
  }
  func.func @transform_7(%arg0: i32, %arg1: i32) -> (i32, i32) {
    %c0_i32 = arith.constant 0 : i32
    %c0_i32_0 = arith.constant 0 : i32
    %c0_i32_1 = arith.constant 0 : i32
    return %c0_i32, %c0_i32_0 : i32, i32
  }
  func.func @transform_8(%arg0: i32, %arg1: i32) -> (i32, i32, i32) {
    %c0_i32 = arith.constant 0 : i32
    %c0_i32_0 = arith.constant 0 : i32
    return %arg0, %arg1, %c0_i32 : i32, i32, i32
  }
}

module attributes {stable_mosaic.version = 11 : i64} {
  func.func @_sem_point_update_kernel(%arg0: i32, %arg1: i32, %arg2: memref<1x8x8xf32, #tpu.memory_space<vmem>>, %arg3: memref<1x8x8xf32, #tpu.memory_space<vmem>>, %arg4: memref<1x8x16xf32, #tpu.memory_space<vmem>>, %arg5: memref<16x16xf32, #tpu.memory_space<vmem>>, %arg6: memref<16x16xf32, #tpu.memory_space<vmem>>, %arg7: memref<1x16xf32, #tpu.memory_space<vmem>>, %arg8: memref<16x8xf32, #tpu.memory_space<vmem>>, %arg9: memref<1x8xf32, #tpu.memory_space<vmem>>, %arg10: memref<1x8x8xf32, #tpu.memory_space<vmem>>) attributes {dimension_semantics = [#tpu.dimension_semantics<parallel>, #tpu.dimension_semantics<parallel>], iteration_bounds = array<i64: 2, 1>, scalar_prefetch = 0 : i64, scratch_operands = 0 : i64, tpu.core_type = #tpu.core_type<tc>, window_params = [{transform_indices = @transform_0, window_bounds = array<i64: 1, 8, 8>}, {transform_indices = @transform_1, window_bounds = array<i64: 1, 8, 8>}, {transform_indices = @transform_2, window_bounds = array<i64: 1, 8, 16>}, {pipeline_mode = #tpu.pipeline_mode<synchronous>, transform_indices = @transform_3, window_bounds = array<i64: 16, 16>}, {pipeline_mode = #tpu.pipeline_mode<synchronous>, transform_indices = @transform_4, window_bounds = array<i64: 16, 16>}, {pipeline_mode = #tpu.pipeline_mode<synchronous>, transform_indices = @transform_5, window_bounds = array<i64: 1, 16>}, {pipeline_mode = #tpu.pipeline_mode<synchronous>, transform_indices = @transform_6, window_bounds = array<i64: 16, 8>}, {pipeline_mode = #tpu.pipeline_mode<synchronous>, transform_indices = @transform_7, window_bounds = array<i64: 1, 8>}, {transform_indices = @transform_8, window_bounds = array<i64: 1, 8, 8>}]} {
    %c8_i32 = arith.constant 8 : i32
    %0 = arith.muli %arg1, %c8_i32 : i32
    %1 = tpu.iota {dimensions = array<i32: 0>} : vector<8x8xi32>
    %2 = vector.broadcast %0 : i32 to vector<8x8xi32>
    %3 = arith.addi %1, %2 : vector<8x8xi32>
    %4 = tpu.iota {dimensions = array<i32: 1>} : vector<8x8xi32>
    %5 = arith.cmpi ne, %3, %4 : vector<8x8xi32>
    %c0 = arith.constant 0 : index
    %c0_0 = arith.constant 0 : index
    %c0_1 = arith.constant 0 : index
    %6 = vector.load %arg4[%c0, %c0_0, %c0_1] : memref<1x8x16xf32, #tpu.memory_space<vmem>>, vector<1x8x16xf32>
    %7 = vector.shape_cast %6 : vector<1x8x16xf32> to vector<8x16xf32>
    %c0_2 = arith.constant 0 : index
    %c0_3 = arith.constant 0 : index
    %c0_4 = arith.constant 0 : index
    %8 = vector.load %arg2[%c0_2, %c0_3, %c0_4] : memref<1x8x8xf32, #tpu.memory_space<vmem>>, vector<1x8x8xf32>
    %9 = vector.shape_cast %8 : vector<1x8x8xf32> to vector<8x8xf32>
    %cst = arith.constant 0.000000e+00 : f32
    %10 = vector.broadcast %cst : f32 to vector<8x8xf32>
    %11 = arith.select %5, %9, %10 : vector<8x8xi1>, vector<8x8xf32>
    %c0_5 = arith.constant 0 : index
    %c0_6 = arith.constant 0 : index
    %c0_7 = arith.constant 0 : index
    %12 = vector.load %arg3[%c0_5, %c0_6, %c0_7] : memref<1x8x8xf32, #tpu.memory_space<vmem>>, vector<1x8x8xf32>
    %13 = vector.shape_cast %12 : vector<1x8x8xf32> to vector<8x8xf32>
    %cst_8 = arith.constant 0.000000e+00 : f32
    %14 = vector.broadcast %cst_8 : f32 to vector<8x8xf32>
    %15 = arith.select %5, %13, %14 : vector<8x8xi1>, vector<8x8xf32>
    %16 = tpu.concatenate %11, %15 in 0 : vector<8x8xf32>, vector<8x8xf32> -> vector<16x8xf32>
    %17 = math.absf %16 : vector<16x8xf32>
    %cst_9 = arith.constant dense<0.000000e+00> : vector<16xf32>
    %18 = vector.multi_reduction <add>, %17, %cst_9 [1] : vector<16x8xf32> to vector<16xf32>
    %19 = vector.shape_cast %18 : vector<16xf32> to vector<16x1xf32>
    %cst_10 = arith.constant 9.99999996E-13 : f32
    %20 = vector.broadcast %cst_10 : f32 to vector<16x1xf32>
    %21 = arith.maximumf %19, %20 : vector<16x1xf32>
    %cst_11 = arith.constant 1.000000e+00 : f32
    %22 = vector.broadcast %cst_11 : f32 to vector<16x1xf32>
    %23 = arith.divf %22, %21 : vector<16x1xf32>
    %cst_12 = arith.constant dense<0.000000e+00> : vector<16x16xf32>
    %24 = tpu.matmul %16, %7, %cst_12 {dimension_numbers = #tpu.dot_dimension_numbers<[1], [0], [0], [1], [0, 0, 1, 1], [], []>} : vector<16x8xf32>, vector<8x16xf32>, vector<16x16xf32> -> vector<16x16xf32>
    %25 = vector.broadcast %23 : vector<16x1xf32> to vector<16x16xf32>
    %26 = arith.mulf %24, %25 : vector<16x16xf32>
    %27 = vector.extract_strided_slice %26 {offsets = [0, 0], sizes = [8, 16], strides = [1, 1]} : vector<16x16xf32> to vector<8x16xf32>
    %c0_13 = arith.constant 0 : index
    %c0_14 = arith.constant 0 : index
    %28 = vector.load %arg5[%c0_13, %c0_14] : memref<16x16xf32, #tpu.memory_space<vmem>>, vector<16x16xf32>
    %cst_15 = arith.constant dense<0.000000e+00> : vector<8x16xf32>
    %29 = tpu.matmul %27, %28, %cst_15 {dimension_numbers = #tpu.dot_dimension_numbers<[1], [0], [0], [1], [0, 0, 1, 1], [], []>} : vector<8x16xf32>, vector<16x16xf32>, vector<8x16xf32> -> vector<8x16xf32>
    %30 = vector.extract_strided_slice %26 {offsets = [8, 0], sizes = [8, 16], strides = [1, 1]} : vector<16x16xf32> to vector<8x16xf32>
    %c0_16 = arith.constant 0 : index
    %c0_17 = arith.constant 0 : index
    %31 = vector.load %arg6[%c0_16, %c0_17] : memref<16x16xf32, #tpu.memory_space<vmem>>, vector<16x16xf32>
    %cst_18 = arith.constant dense<0.000000e+00> : vector<8x16xf32>
    %32 = tpu.matmul %30, %31, %cst_18 {dimension_numbers = #tpu.dot_dimension_numbers<[1], [0], [0], [1], [0, 0, 1, 1], [], []>} : vector<8x16xf32>, vector<16x16xf32>, vector<8x16xf32> -> vector<8x16xf32>
    %33 = arith.addf %29, %32 : vector<8x16xf32>
    %c0_19 = arith.constant 0 : index
    %c0_20 = arith.constant 0 : index
    %34 = vector.load %arg7[%c0_19, %c0_20] : memref<1x16xf32, #tpu.memory_space<vmem>>, vector<1x16xf32>
    %35 = vector.broadcast %34 : vector<1x16xf32> to vector<8x16xf32>
    %36 = arith.addf %33, %35 : vector<8x16xf32>
    %cst_21 = arith.constant 0.000000e+00 : f32
    %37 = vector.broadcast %cst_21 : f32 to vector<8x16xf32>
    %38 = arith.cmpf oge, %36, %37 : vector<8x16xf32>
    %cst_22 = arith.constant 0.00999999977 : f32
    %39 = vector.broadcast %cst_22 : f32 to vector<8x16xf32>
    %40 = arith.mulf %39, %36 : vector<8x16xf32>
    %41 = arith.select %38, %36, %40 : vector<8x16xi1>, vector<8x16xf32>
    %c0_23 = arith.constant 0 : index
    %c0_24 = arith.constant 0 : index
    %42 = vector.load %arg8[%c0_23, %c0_24] : memref<16x8xf32, #tpu.memory_space<vmem>>, vector<16x8xf32>
    %cst_25 = arith.constant dense<0.000000e+00> : vector<8x8xf32>
    %43 = tpu.matmul %41, %42, %cst_25 {dimension_numbers = #tpu.dot_dimension_numbers<[1], [0], [0], [1], [0, 0, 1, 1], [], []>} : vector<8x16xf32>, vector<16x8xf32>, vector<8x8xf32> -> vector<8x8xf32>
    %c0_26 = arith.constant 0 : index
    %c0_27 = arith.constant 0 : index
    %44 = vector.load %arg9[%c0_26, %c0_27] : memref<1x8xf32, #tpu.memory_space<vmem>>, vector<1x8xf32>
    %45 = vector.broadcast %44 : vector<1x8xf32> to vector<8x8xf32>
    %46 = arith.addf %43, %45 : vector<8x8xf32>
    %cst_28 = arith.constant 0.000000e+00 : f32
    %47 = vector.broadcast %cst_28 : f32 to vector<8x8xf32>
    %48 = arith.cmpf oge, %46, %47 : vector<8x8xf32>
    %cst_29 = arith.constant 0.00999999977 : f32
    %49 = vector.broadcast %cst_29 : f32 to vector<8x8xf32>
    %50 = arith.mulf %49, %46 : vector<8x8xf32>
    %51 = arith.select %48, %46, %50 : vector<8x8xi1>, vector<8x8xf32>
    %52 = vector.shape_cast %51 : vector<8x8xf32> to vector<1x8x8xf32>
    %c0_30 = arith.constant 0 : index
    %c0_31 = arith.constant 0 : index
    %c0_32 = arith.constant 0 : index
    %53 = vector.load %arg10[%c0_30, %c0_31, %c0_32] : memref<1x8x8xf32, #tpu.memory_space<vmem>>, vector<1x8x8xf32>
    tpu.vector_store %arg10[%c0_30, %c0_31, %c0_32], %52 {strides = array<i32>} : memref<1x8x8xf32, #tpu.memory_space<vmem>>, vector<1x8x8xf32>,
    return
  }
  func.func @transform_0(%arg0: i32, %arg1: i32) -> (i32, i32, i32) {
    %c0_i32 = arith.constant 0 : i32
    %c0_i32_0 = arith.constant 0 : i32
    return %arg0, %arg1, %c0_i32 : i32, i32, i32
  }
  func.func @transform_1(%arg0: i32, %arg1: i32) -> (i32, i32, i32) {
    %c0_i32 = arith.constant 0 : i32
    %c0_i32_0 = arith.constant 0 : i32
    return %arg0, %arg1, %c0_i32 : i32, i32, i32
  }
  func.func @transform_2(%arg0: i32, %arg1: i32) -> (i32, i32, i32) {
    %c0_i32 = arith.constant 0 : i32
    %c0_i32_0 = arith.constant 0 : i32
    %c0_i32_1 = arith.constant 0 : i32
    return %arg0, %c0_i32, %c0_i32_0 : i32, i32, i32
  }
  func.func @transform_3(%arg0: i32, %arg1: i32) -> (i32, i32) {
    %c0_i32 = arith.constant 0 : i32
    %c0_i32_0 = arith.constant 0 : i32
    %c0_i32_1 = arith.constant 0 : i32
    return %c0_i32, %c0_i32_0 : i32, i32
  }
  func.func @transform_4(%arg0: i32, %arg1: i32) -> (i32, i32) {
    %c0_i32 = arith.constant 0 : i32
    %c0_i32_0 = arith.constant 0 : i32
    %c0_i32_1 = arith.constant 0 : i32
    return %c0_i32, %c0_i32_0 : i32, i32
  }
  func.func @transform_5(%arg0: i32, %arg1: i32) -> (i32, i32) {
    %c0_i32 = arith.constant 0 : i32
    %c0_i32_0 = arith.constant 0 : i32
    %c0_i32_1 = arith.constant 0 : i32
    return %c0_i32, %c0_i32_0 : i32, i32
  }
  func.func @transform_6(%arg0: i32, %arg1: i32) -> (i32, i32) {
    %c0_i32 = arith.constant 0 : i32
    %c0_i32_0 = arith.constant 0 : i32
    %c0_i32_1 = arith.constant 0 : i32
    return %c0_i32, %c0_i32_0 : i32, i32
  }
  func.func @transform_7(%arg0: i32, %arg1: i32) -> (i32, i32) {
    %c0_i32 = arith.constant 0 : i32
    %c0_i32_0 = arith.constant 0 : i32
    %c0_i32_1 = arith.constant 0 : i32
    return %c0_i32, %c0_i32_0 : i32, i32
  }
  func.func @transform_8(%arg0: i32, %arg1: i32) -> (i32, i32, i32) {
    %c0_i32 = arith.constant 0 : i32
    %c0_i32_0 = arith.constant 0 : i32
    return %arg0, %arg1, %c0_i32 : i32, i32, i32
  }
}

</mosaic_0001>

<bundles_post_ra>
// kernel: tpu_custom_call.1
= control target key start
LH: loop header
LB: loop body
LE: loop exit
PB: predicated region body
PF: predicated region fallthrough
CT: control target
= control target key end

     0   :  { %s1347_s0 = inlined_call_operand.vmem [shape: f32[2,8,8], index: 0, kind: input, shape index: {}]   ;;  %s1348_s1 = inlined_call_operand.hbm [shape: f32[2,8,8], index: 1, kind: input, shape index: {}]   ;;  %s1349_s2 = inlined_call_operand.hbm [shape: f32[2,8,16], index: 2, kind: input, shape index: {}]   ;;  %s1350_s3 = inlined_call_operand.hbm [shape: f32[16,16], index: 3, kind: input, shape index: {}]   ;;  %s1351_s4 = inlined_call_operand.hbm [shape: f32[16,16], index: 4, kind: input, shape index: {}]   ;;  %s1352_s5 = inlined_call_operand.vmem [shape: f32[1,16], index: 5, kind: input, shape index: {}]   ;;  %s1353_s6 = inlined_call_operand.vmem [shape: f32[16,8], index: 6, kind: input, shape index: {}]   ;;  %s1354_s7 = inlined_call_operand.vmem [shape: f32[1,8], index: 7, kind: input, shape index: {}]   ;;  %s1355_s8 = inlined_call_operand.hbm [shape: f32[2,8,8], index: 8, kind: output, shape index: {}]  }
   0x1   :  { %1363 = sst [smem:[#allocation23_spill]] %s1350_s3 }
   0x2   :  { %1364 = sst [smem:[#allocation24_spill]] %s1351_s4 }
   0x3   :  { %13 = vsyncpa [#allocation3], 0 }
   0x4   :  { %15 = vsyncpa [#allocation3 + $0x1], 0 }
   0x5   :  { %16 = vsyncpa [#allocation6], 0 }
   0x6   :  { %18 = vsyncpa [#allocation6 + $0x1], 0 }
   0x7   :  { %19 = vsyncpa [#allocation9], 0 }
   0x8   :  { %20 = vsyncpa [#allocation4], 0 }
   0x9   :  { %22 = vsyncpa [#allocation4 + $0x1], 0  ;;  %s1158_s27 = smov 0   ;;  %s1160_s28 = smov 0  }
   0xa   :  { %s1162_s29 = smov 0   ;;  %s1164_s30 = smov 0  }
   0xb   :  { %s1166_s9 = smov 0   ;;  %s1168_s10 = smov 0  }
   0xc LB: > { %1365 = sst [smem:[#allocation16_spill]] %s1087_s27  ;;  %s1189_s11 = sadd.s32 4294967295, %s1107_s10   ;;  %s1107_s10 = sphi %s1168_s10, %s28_s10   ;;  %s1103_s9 = sphi %s1166_s9, %s1385_s9   ;;  %s1099_s30 = sphi %s1164_s30, %s1384_s30   ;;  %s1095_s29 = sphi %s1162_s29, %s1383_s29   ;;  %s1091_s28 = sphi %s1160_s28, %s1387_s28   ;;  %s1087_s27 = sphi %s1158_s27, %s1386_s27  }
   0xd   : > { %1366 = sst [smem:[#allocation17_spill]] %s1095_s29  ;;  %p773_p0 = scmp.ge.s32.totalorder %s1107_s10, 1 }
   0xe   : > { %1367 = sst [smem:[#allocation18_spill]] %s1103_s9  ;;  %p91_p1 = scmp.eq.s32.totalorder %s1189_s11, 0 }
   0xf   : > { %p260_p2 = scmp.lt.s32.totalorder %s1107_s10, 3  ;;  %s1368_s3 = sld [smem:[#allocation23_spill]] }
  0x10   : > { %s1109_s16 = smov [#allocation7]   ;;  %p776_p6 = scmp.ge.s32.totalorder %s1107_s10, 2 }
  0x11   : > { %p1197_p3 = pnand %p773_p0, %p260_p2  ;;  %s273_s17 = sshll.u32 %s1109_s16, 4  ;;  %s274_s17 = int_to_ptr.vmem [resolvable:$true] %s273_s17 }
  0x12   : > { %s1370_s4 = sld [smem:[#allocation24_spill]]  ;;  %s1110_s21 = smov 128  }
  0x13   : > { %p811_p4 = pneg %p1197_p3  ;;  %s1111_s22 = smov 8  }
  0x14   : > { %s1112_s23 = smov [#allocation8]   ;;  %s772_s25 = sadd.s32 4294967294, %s1107_s10  }
  0x15   : > { %s271_s14 = sshll.u32 %s1368_s3, 4  ;;  %p812_p5 = pnand %p811_p4, %p91_p1  ;;  %s272_s14 = int_to_ptr.hbm [resolvable:$true] %s271_s14 }
  0x16   : > { %s287_s24 = sshll.u32 %s1112_s23, 4  ;;  %s40_s26 = sadd.s32 1, %s1103_s9  ;;  %s288_s24 = int_to_ptr.vmem [resolvable:$true] %s287_s24 }
  0x17   : > { %814 = dma.hbm_to_vmem [thread:$0]  (!%p812_p5), %s272_s14, 256, %s274_s17, [#allocation6], %s1110_s21, %s1110_s21, %s1111_s22  }
  0x18   : > { %s285_s20 = sshll.u32 %s1370_s4, 4  ;;  %p42_p7 = scmp.ge.s32.totalorder %s40_s26, 2  ;;  %s286_s20 = int_to_ptr.hbm [resolvable:$true] %s285_s20 }
  0x19   : > { %817 = dma.hbm_to_vmem [thread:$0]  (!%p812_p5), %s286_s20, 256, %s288_s24, [#allocation9], %s1110_s21, %s1110_s21, %s1111_s22  }
  0x1a   : > { %s77_s12 = sadd.s32 1, %s1095_s29  ;;  %p84_p8 = scmp.ne.s32.totalorder %s1095_s29, %s1091_s28 }
  0x1b   : > { %p85_p9 = scmp.eq.s32.totalorder %s1107_s10, 0  ;;  %s1389_s26 = smov (%p42_p7, %s40_s26), 0 }
  0x1c   : > { %1371 = sst [smem:[#allocation19_spill]] %s1389_s26  ;;  %p90_p11 = scmp.ne.s32.totalorder %s1091_s28, %s1087_s27 }
  0x1d   : > { %p1217_p10 = por %p85_p9, %p84_p8  ;;  %s72_s14 = ssub.s32 %s1103_s9, %s1389_s26 }
  0x1e   : > { %p247_p12 = scmp.eq.s32.totalorder %s1189_s11, 1  ;;  %p75_p13 = scmp.eq.s32.totalorder %s72_s14, 0 }
  0x1f   : > { %p1228_p0 = por %p91_p1, %p90_p11  ;;  %p253_p4 = scmp.eq.s32.totalorder %s772_s25, 1 }
  0x20   : > { %p1232_p2 = por %p247_p12, %p84_p8  ;;  %p831_p7 = scmp.lt.s32.totalorder %s1107_s10, 2 }
  0x21   : > { %s1237_s18 = scalar_select %p75_p13, %s1095_s29, %s77_s12  }
  0x22   : > { %s1374_s17 = scalar_select %p1232_p2, 1, 0 }
  0x23   : > { %1376 = sst [smem:[#allocation21_spill]] %s1237_s18  ;;  %p1239_p5 = por %p253_p4, %p90_p11 }
  0x24   : > { %1375 = sst [smem:[#allocation20_spill]] %s1374_s17  ;;  %s320_s20 = sand.u32 1, %s1095_s29  }
  0x25   : > { %s1377_s19 = scalar_select %p1239_p5, 1, 0 }
  0x26   : > { %s778_s21 = sshll.u32 %s1103_s9, 3  ;;  %s777_s22 = sshll.u32 %s320_s20, 3 }
  0x27   : > { %1378 = sst [smem:[#allocation22_spill]] %s1377_s19  ;;  %s329_s14 = scalar_lea.hbm %s1348_s1, %s778_s21 }
  0x28   : > { %s331_s3 = sshll.u32 %s329_s14, 4  ;;  %s324_s4 = scalar_lea.vmem [#allocation2], %s777_s22  ;;  %s332_s3 = int_to_ptr.hbm [resolvable:$true] %s331_s3 }
  0x29   : > { %s333_s26 = sshll.u32 %s324_s4, 4  ;;  %p819_p8 = pnand %p831_p7, %p1217_p10  ;;  %s334_s26 = int_to_ptr.vmem [resolvable:$true] %s333_s26 }
  0x2a   : > { %s348_s18 = scalar_lea.hbm %s1349_s2, %s778_s21  ;;  %s340_s19 = sand.u32 1, %s1107_s10  }
  0x2b   : > { %s321_s27 = scalar_lea.sflag [#allocation3], %s320_s20  ;;  %s350_s9 = sshll.u32 %s348_s18, 4  ;;  %s351_s9 = int_to_ptr.hbm [resolvable:$true] %s350_s9 }
  0x2c   : > { %821 = dma.hbm_to_vmem [thread:$0]  (!%p819_p8), %s332_s3, 128, %s334_s26, %s321_s27  }
  0x2d   : > { %s344_s29 = scalar_lea.vmem [#allocation5], %s777_s22  ;;  %s341_s23 = scalar_lea.sflag [#allocation6], %s340_s19 }
  0x2e   : > { %s352_s17 = sshll.u32 %s344_s29, 4  ;;  %361 = sbr.rel (%p1197_p3) target bundleno = 488 (0x1e8), region = 52  ;;  %s353_s17 = int_to_ptr.vmem [resolvable:$true] %s352_s17 }
  0x2f   : > { %824 = dma.hbm_to_vmem [thread:$0]  (!%p819_p8), %s351_s9, 128, %s353_s17, %s341_s23  }
  0x30   : > { %s1258_s4 = sand.u32 (!%p1197_p3), 1, %s1091_s28  }
  0x31   : > { %s1261_s13 = sshll.u32 (!%p1197_p3), %s1258_s4, 3  ;;  %s364_s3 = scalar_lea.sflag (!%p1197_p3), [#allocation3], %s1258_s4 }
  0x32   : > { %s367_s27 = scalar_lea.vmem (!%p1197_p3), [#allocation2], %s1261_s13 }
  0x33   : > { %1066 = dma.done.wait (%p1228_p0), %s364_s3, 128  }
  0x34   : > { %1068 = vsyncadd (%p1228_p0), %s364_s3, 4294967168  ;;  %s373_s29 = sand.u32 1, %s1189_s11   ;;  %s377_s15 = scalar_lea.vmem [#allocation5], %s1261_s13 }
  0x35   : > { %s374_s9 = scalar_lea.sflag [#allocation6], %s373_s29 }
  0x36   : > { %1070 = dma.done.wait (%p1228_p0), %s374_s9, 128  }
  0x37   : > { %1072 = vsyncadd (%p1228_p0), %s374_s9, 4294967168 }
  0x38   : > { %1074 = dma.done.wait (%p91_p1), [#allocation6], 256  }
  0x39   : > { %1076 = vsyncadd (%p91_p1), [#allocation6], 4294967040 }
  0x3a   : > { %1078 = dma.done.wait (%p91_p1), [#allocation9], 256  }
  0x3b   : > { %1080 = vsyncadd (%p91_p1), [#allocation9], 4294967040  ;;  %p433_p3 = scmp.lt.s32.totalorder %s1099_s30, 1  ;;  %v441_v0 = vlaneseq  ;;  %v451_v4 = vld [vmem:[%s367_s27] sm:$0xff]  ;;  %v448_v5 = vld [vmem:[%s377_s15] sm:$0xff]  ;;  %vm455_vm1 = vcmask 64512  }
  0x3c   : > { %515 = vmatpush.msra.mxu0 %v448_v5  ;;  %v526_v12 = vld [vmem:[#allocation7 + $0x8] sm:$0xff]  ;;  %v525_v13 = vld [vmem:[#allocation7] sm:$0xff]  ;;  %v528_v14 = vld [vmem:[#allocation8 + $0x8] sm:$0xff]  ;;  %vm529_vm6 = vcmask 130048   ;;  %s794_s25 = sshll.u32 %s1099_s30, 3  ;;  %s432_s15 = scalar_lea.vmem [#allocation10], %s1261_s13 }
  0x3d   : > { %s434_s26 = scalar_select %p433_p3, %s1099_s30, 1  ;;  %v442_v1 = vshrl.u32 %v441_v0, 7  ;;  %v446_v2 = vand.u32 127, %v441_v0  ;;  %570 = vmatpush.msra.mxu2 %v526_v12  ;;  %547 = vmatpush.msra.mxu1 %v528_v14  ;;  %v527_v15 = vld [vmem:[#allocation8] sm:$0xff]  ;;  %v585_v44 = vld [vmem:[%s1353_s6 + $0x8] sm:$0xff]  ;;  %v584_v45 = vld [vmem:[%s1353_s6] sm:$0xff] }
  0x3e   : > { %607 = vmatpush.msra.mxu3 %v585_v44  ;;  %v887_v46 = vld [vmem:[%s1352_s5] ss:$0 sm:$0xff]  ;;  %s629_s29 = scalar_lea.hbm %s1355_s8, %s794_s25  ;;  %s618_s30 = scalar_lea.sflag [#allocation4], %s1258_s4 }
  0x3f   : > { %s787_s16 = sshll.u32 %s434_s26, 3  ;;  %vm447_vm0 = vcmp.ne.s32.totalorder %v442_v1, %v446_v2  ;;  %571 = vmatpush.msra.mxu2 %v525_v13  ;;  %548 = vmatpush.msra.mxu1 %v527_v15  ;;  %v888_v53 = vld [vmem:[%s1354_s7] ss:$0 sm:$0xff]  ;;  %s631_s26 = sshll.u32 %s432_s15, 4  ;;  %s632_s26 = int_to_ptr.vmem [resolvable:$true] %s631_s26 }
  0x40   : > { %s439_s19 = scalar_lea.vmem %s1347_s0, %s787_s16  ;;  %v452_v8 = vsel %vm447_vm0, %v451_v4, 0.0  ;;  %608 = vmatpush.msra.mxu3 %v584_v45  ;;  %s633_s16 = sshll.u32 %s629_s29, 4  ;;  %s634_s16 = int_to_ptr.hbm [resolvable:$true] %s633_s16 }
  0x41   : > { %v449_v3 = vld [vmem:[%s439_s19] sm:$0xff]  ;;  %v454_v10 = vand.u32 2147483647, %v452_v8  ;;  %s1027_s17 = sshra.s32 %s634_s16, 4  ;;  %s1033_s13 = scalar_lea.hbm %s1355_s8, 16  ;;  %s1028_s17 = int_to_ptr.hbm [resolvable:$true] %s1027_s17 }
  0x42   : > { %v450_v6 = vsel %vm447_vm0, %v449_v3, 0.0  ;;  %s1029_s18 = scalar_lea.hbm %s1028_s17, 8  ;;  %p1034_p11 = scmp.lt.s32.totalorder %s1028_s17, %s1355_s8 }
  0x43   : > { %v453_v7 = vand.u32 2147483647, %v450_v6  ;;  %788 = vmatmul.msk.f32.vlgmr.msra.gmra.mxu0 %vm455_vm1, %v450_v6  ;;  %v459_v11 = vsel %vm455_vm1, %v454_v10, 0.0  ;;  %p1030_p1 = scmp.ne.s32.totalorder %s1028_s17, %s1029_s18  ;;  %p1035_p12 = scmp.lt.s32.totalorder %s1033_s13, %s1029_s18 }
  0x45   : > { %v456_v9 = vsel %vm455_vm1, %v453_v7, 0.0  ;;  %p1031_p9 = pnand %p1030_p1, %p1232_p2  ;;  %p1036_p13 = por %p1035_p12, %p1034_p11 }
  0x46   : > { %457 = vadd.xlane.f32.xlu0 %v456_v9 }
  0x47   : > { %p1032_p10 = pneg %p1031_p9 }
  0x49   : > { %p1037_p0 = pnand %p1036_p13, %p1032_p10 }
  0x4b   : > { %789 = vmatmul.msk.f32.gmra.mxu0 %vm455_vm1, %v452_v8 }
  0x4e   : > { %460 = vadd.xlane.f32.xlu0 %v459_v11 }
  0xb9   : > { %v458_v16 = vpop.xlane.xlu0 %457 }
  0xba   : > { %v462_v17 = vmax.f32 %v458_v16, 1e-12 }
  0xbc   : > { %889 = vrcp.f32 %v462_v17  ;;  %v475_v23 = vand.u32 2147483648, %v462_v17  ;;  %v473_v25 = vand.u32 2147483647, %v462_v17  ;;  %vm469_vm3 = vweird.f32 %v462_v17 }
  0xbe   : > { %v476_v29 = vor.u32 1.1754944e-38, %v475_v23  ;;  %vm474_vm5 = vcmp.eq.f32.partialorder %v473_v25, 8.507059e+37 }
  0xc0   : > { %v517_v26 = vpop.f32.mrf.mxu0 }
  0xc1   : > { %v461_v18 = vpop.xlane.xlu0 %460 }
  0xc2   : > { %v890_v19 = vpop.eup %889  ;;  %v463_v20 = vmax.f32 %v461_v18, 1e-12 }
  0xc3   : > { %v465_v21 = vmul.f32 %v890_v19, %v462_v17  ;;  %vm470_vm2 = vweird.f32 %v890_v19 }
  0xc4   : > { %891 = vrcp.f32 %v463_v20  ;;  %vm471_vm4 = vmor %vm469_vm3, %vm470_vm2  ;;  %v490_v35 = vand.u32 2147483648, %v463_v20  ;;  %v488_v37 = vand.u32 2147483647, %v463_v20  ;;  %vm484_vm8 = vweird.f32 %v463_v20 }
  0xc5   : > { %v466_v22 = vsub.f32 1.0, %v465_v21 }
  0xc6   : > { %v491_v39 = vor.u32 1.1754944e-38, %v490_v35  ;;  %vm489_vm10 = vcmp.eq.f32.partialorder %v488_v37, 8.507059e+37 }
  0xc7   : > { %v467_v24 = vmul.f32 %v890_v19, %v466_v22 }
  0xc8   : > { %v520_v40 = vpop.f32.mrf.mxu0 }
  0xc9   : > { %v468_v27 = vadd.f32 %v890_v19, %v467_v24 }
  0xca   : > { %v892_v28 = vpop.eup %891 }
  0xcb   : > { %v480_v30 = vmul.f32 %v892_v28, %v463_v20  ;;  %v472_v31 = vsel %vm471_vm4, %v890_v19, %v468_v27  ;;  %vm485_vm7 = vweird.f32 %v892_v28 }
  0xcc   : > { %v477_v32 = vsel %vm474_vm5, %v476_v29, %v472_v31  ;;  %vm486_vm9 = vmor %vm484_vm8, %vm485_vm7 }
  0xcd   : > { %v523_v33 = vmul.f32 %v517_v26, %v477_v32  ;;  %v481_v34 = vsub.f32 1.0, %v480_v30 }
  0xcf   : > { %791 = vmatmul.msk.f32.vlgmr.msra.gmra.mxu2 %vm529_vm6, %v523_v33  ;;  %v482_v36 = vmul.f32 %v892_v28, %v481_v34 }
  0xd1   : > { %v483_v38 = vadd.f32 %v892_v28, %v482_v36 }
  0xd3   : > { %v487_v41 = vsel %vm486_vm9, %v892_v28, %v483_v38 }
  0xd4   : > { %v492_v42 = vsel %vm489_vm10, %v491_v39, %v487_v41 }
  0xd5   : > { %v524_v43 = vmul.f32 %v520_v40, %v492_v42 }
  0xd7   : > { %790 = vmatmul.msk.f32.vlgmr.msra.gmra.mxu1 %vm529_vm6, %v524_v43 }
 0x152   : > { %v573_v47 = vpop.f32.mrf.mxu2 }
 0x154   : > { %v550_v48 = vpop.f32.mrf.mxu1 }
 0x155   : > { %v574_v49 = vadd.f32 %v573_v47, %v550_v48 }
 0x157   : > { %v580_v50 = vadd.f32 %v887_v46, %v574_v49 }
 0x159   : > { %vm581_vm11 = vcmp.ge.f32.partialorder %v580_v50, 0.0  ;;  %v582_v51 = vmul.f32 0.01, %v580_v50 }
 0x15b   : > { %v583_v52 = vsel %vm581_vm11, %v580_v50, %v582_v51 }
 0x15c   : > { %792 = vmatmul.msk.f32.vlgmr.msra.gmra.mxu3 %vm529_vm6, %v583_v52 }
 0x1df   : > { %v610_v54 = vpop.f32.mrf.mxu3 }
 0x1e0   : > { %v611_v55 = vadd.f32 %v888_v53, %v610_v54 }
 0x1e2   : > { %vm613_vm12 = vcmp.ge.f32.partialorder %v611_v55, 0.0  ;;  %v614_v56 = vmul.f32 0.01, %v611_v55 }
 0x1e4   : > { %v615_v57 = vsel %vm613_vm12, %v611_v55, %v614_v56 }
 0x1e5   : > { %616 = vst.msk [vmem:[%s432_s15] sm:$0xff] %vm455_vm1, %v615_v57 }
 0x1e6   : > { %1040 = shalt.err (!%p1037_p0)
}
 0x1e7   : > { %809 = dma.vmem_to_hbm [thread:$0]  (%p1232_p2), %s632_s26, 128, %s634_s16, %s618_s30  }
 0x1e8 PF: > { %s1380_s4 = sld [smem:[#allocation16_spill]]  ;;  %p826_p4 = pnand %p776_p6, %p1239_p5 }
 0x1ea   : > { %p827_p7 = pneg %p826_p4 }
 0x1ee   : > { %s645_s24 = sand.u32 1, %s1380_s4  }
 0x1ef   : > { %s646_s14 = scalar_lea.sflag [#allocation4], %s645_s24 }
 0x1f0   : > { %1082 = dma.done.wait (%p827_p7), %s646_s14, 128  }
 0x1f1   : > { %1084 = vsyncadd (%p827_p7), %s646_s14, 4294967168  ;;  %s28_s10 = sadd.s32 1, %s1107_s10   ;;  %s1382_s25 = sld [smem:[#allocation17_spill]] }
 0x1f2   : > { %p25_p8 = scmp.ge.s32.totalorder %s28_s10, 4   ;;  %s1383_s29 = sld [smem:[#allocation21_spill]] }
 0x1f3   : > { %s1384_s30 = sld [smem:[#allocation18_spill]]  ;;  %s1386_s27 = smov %s1091_s28 }
 0x1f4   : > { %s1385_s9 = sld [smem:[#allocation19_spill]]  ;;  %27 = sbr.rel (!%p25_p8) target bundleno = 12 (0xc), region = 121 }
 0x1f7   : > { %s1387_s28 = smov %s1382_s25 }
 0x1f9   :  { %652 = vsyncpa [#allocation3], 1 }
 0x1fa   :  { %654 = vsyncpa [#allocation3 + $0x1], 1 }
 0x1fb   :  { %655 = vsyncpa [#allocation6], 1 }
 0x1fc   :  { %657 = vsyncpa [#allocation6 + $0x1], 1 }
 0x1fd   :  { %658 = vsyncpa [#allocation9], 1 }
 0x1fe   :  { %659 = vsyncpa [#allocation4], 1 }
 0x1ff   :  { %661 = vsyncpa [#allocation4 + $0x1], 1 }

// kernel: tpu_custom_call.1
= control target key start
LH: loop header
LB: loop body
LE: loop exit
PB: predicated region body
PF: predicated region fallthrough
CT: control target
= control target key end

     0   :  { %s1347_s0 = inlined_call_operand.vmem [shape: f32[2,8,8], index: 0, kind: input, shape index: {}]   ;;  %s1348_s1 = inlined_call_operand.hbm [shape: f32[2,8,8], index: 1, kind: input, shape index: {}]   ;;  %s1349_s2 = inlined_call_operand.hbm [shape: f32[2,8,16], index: 2, kind: input, shape index: {}]   ;;  %s1350_s3 = inlined_call_operand.hbm [shape: f32[16,16], index: 3, kind: input, shape index: {}]   ;;  %s1351_s4 = inlined_call_operand.hbm [shape: f32[16,16], index: 4, kind: input, shape index: {}]   ;;  %s1352_s5 = inlined_call_operand.vmem [shape: f32[1,16], index: 5, kind: input, shape index: {}]   ;;  %s1353_s6 = inlined_call_operand.vmem [shape: f32[16,8], index: 6, kind: input, shape index: {}]   ;;  %s1354_s7 = inlined_call_operand.vmem [shape: f32[1,8], index: 7, kind: input, shape index: {}]   ;;  %s1355_s8 = inlined_call_operand.hbm [shape: f32[2,8,8], index: 8, kind: output, shape index: {}]  }
   0x1   :  { %1363 = sst [smem:[#allocation23_spill]] %s1350_s3 }
   0x2   :  { %1364 = sst [smem:[#allocation24_spill]] %s1351_s4 }
   0x3   :  { %13 = vsyncpa [#allocation3], 0 }
   0x4   :  { %15 = vsyncpa [#allocation3 + $0x1], 0 }
   0x5   :  { %16 = vsyncpa [#allocation6], 0 }
   0x6   :  { %18 = vsyncpa [#allocation6 + $0x1], 0 }
   0x7   :  { %19 = vsyncpa [#allocation9], 0 }
   0x8   :  { %20 = vsyncpa [#allocation4], 0 }
   0x9   :  { %22 = vsyncpa [#allocation4 + $0x1], 0  ;;  %s1158_s27 = smov 0   ;;  %s1160_s28 = smov 0  }
   0xa   :  { %s1162_s29 = smov 0   ;;  %s1164_s30 = smov 0  }
   0xb   :  { %s1166_s9 = smov 0   ;;  %s1168_s10 = smov 0  }
   0xc LB: > { %1365 = sst [smem:[#allocation16_spill]] %s1087_s27  ;;  %s1189_s11 = sadd.s32 4294967295, %s1107_s10   ;;  %s1107_s10 = sphi %s1168_s10, %s28_s10   ;;  %s1103_s9 = sphi %s1166_s9, %s1385_s9   ;;  %s1099_s30 = sphi %s1164_s30, %s1384_s30   ;;  %s1095_s29 = sphi %s1162_s29, %s1383_s29   ;;  %s1091_s28 = sphi %s1160_s28, %s1387_s28   ;;  %s1087_s27 = sphi %s1158_s27, %s1386_s27  }
   0xd   : > { %1366 = sst [smem:[#allocation17_spill]] %s1095_s29  ;;  %p773_p0 = scmp.ge.s32.totalorder %s1107_s10, 1 }
   0xe   : > { %1367 = sst [smem:[#allocation18_spill]] %s1103_s9  ;;  %p91_p1 = scmp.eq.s32.totalorder %s1189_s11, 0 }
   0xf   : > { %p260_p2 = scmp.lt.s32.totalorder %s1107_s10, 3  ;;  %s1368_s3 = sld [smem:[#allocation23_spill]] }
  0x10   : > { %s1109_s16 = smov [#allocation7]   ;;  %p776_p6 = scmp.ge.s32.totalorder %s1107_s10, 2 }
  0x11   : > { %p1197_p3 = pnand %p773_p0, %p260_p2  ;;  %s273_s17 = sshll.u32 %s1109_s16, 4  ;;  %s274_s17 = int_to_ptr.vmem [resolvable:$true] %s273_s17 }
  0x12   : > { %s1370_s4 = sld [smem:[#allocation24_spill]]  ;;  %s1110_s21 = smov 128  }
  0x13   : > { %p811_p4 = pneg %p1197_p3  ;;  %s1111_s22 = smov 8  }
  0x14   : > { %s1112_s23 = smov [#allocation8]   ;;  %s772_s25 = sadd.s32 4294967294, %s1107_s10  }
  0x15   : > { %s271_s14 = sshll.u32 %s1368_s3, 4  ;;  %p812_p5 = pnand %p811_p4, %p91_p1  ;;  %s272_s14 = int_to_ptr.hbm [resolvable:$true] %s271_s14 }
  0x16   : > { %s287_s24 = sshll.u32 %s1112_s23, 4  ;;  %s40_s26 = sadd.s32 1, %s1103_s9  ;;  %s288_s24 = int_to_ptr.vmem [resolvable:$true] %s287_s24 }
  0x17   : > { %814 = dma.hbm_to_vmem [thread:$0]  (!%p812_p5), %s272_s14, 256, %s274_s17, [#allocation6], %s1110_s21, %s1110_s21, %s1111_s22  }
  0x18   : > { %s285_s20 = sshll.u32 %s1370_s4, 4  ;;  %p42_p7 = scmp.ge.s32.totalorder %s40_s26, 2  ;;  %s286_s20 = int_to_ptr.hbm [resolvable:$true] %s285_s20 }
  0x19   : > { %817 = dma.hbm_to_vmem [thread:$0]  (!%p812_p5), %s286_s20, 256, %s288_s24, [#allocation9], %s1110_s21, %s1110_s21, %s1111_s22  }
  0x1a   : > { %s77_s12 = sadd.s32 1, %s1095_s29  ;;  %p84_p8 = scmp.ne.s32.totalorder %s1095_s29, %s1091_s28 }
  0x1b   : > { %p85_p9 = scmp.eq.s32.totalorder %s1107_s10, 0  ;;  %s1389_s26 = smov (%p42_p7, %s40_s26), 0 }
  0x1c   : > { %1371 = sst [smem:[#allocation19_spill]] %s1389_s26  ;;  %p90_p11 = scmp.ne.s32.totalorder %s1091_s28, %s1087_s27 }
  0x1d   : > { %p1217_p10 = por %p85_p9, %p84_p8  ;;  %s72_s14 = ssub.s32 %s1103_s9, %s1389_s26 }
  0x1e   : > { %p247_p12 = scmp.eq.s32.totalorder %s1189_s11, 1  ;;  %p75_p13 = scmp.eq.s32.totalorder %s72_s14, 0 }
  0x1f   : > { %p1228_p0 = por %p91_p1, %p90_p11  ;;  %p253_p4 = scmp.eq.s32.totalorder %s772_s25, 1 }
  0x20   : > { %p1232_p2 = por %p247_p12, %p84_p8  ;;  %p831_p7 = scmp.lt.s32.totalorder %s1107_s10, 2 }
  0x21   : > { %s1237_s18 = scalar_select %p75_p13, %s1095_s29, %s77_s12  }
  0x22   : > { %s1374_s17 = scalar_select %p1232_p2, 1, 0 }
  0x23   : > { %1376 = sst [smem:[#allocation21_spill]] %s1237_s18  ;;  %p1239_p5 = por %p253_p4, %p90_p11 }
  0x24   : > { %1375 = sst [smem:[#allocation20_spill]] %s1374_s17  ;;  %s320_s20 = sand.u32 1, %s1095_s29  }
  0x25   : > { %s1377_s19 = scalar_select %p1239_p5, 1, 0 }
  0x26   : > { %s778_s21 = sshll.u32 %s1103_s9, 3  ;;  %s777_s22 = sshll.u32 %s320_s20, 3 }
  0x27   : > { %1378 = sst [smem:[#allocation22_spill]] %s1377_s19  ;;  %s329_s14 = scalar_lea.hbm %s1348_s1, %s778_s21 }
  0x28   : > { %s331_s3 = sshll.u32 %s329_s14, 4  ;;  %s324_s4 = scalar_lea.vmem [#allocation2], %s777_s22  ;;  %s332_s3 = int_to_ptr.hbm [resolvable:$true] %s331_s3 }
  0x29   : > { %s333_s26 = sshll.u32 %s324_s4, 4  ;;  %p819_p8 = pnand %p831_p7, %p1217_p10  ;;  %s334_s26 = int_to_ptr.vmem [resolvable:$true] %s333_s26 }
  0x2a   : > { %s348_s18 = scalar_lea.hbm %s1349_s2, %s778_s21  ;;  %s340_s19 = sand.u32 1, %s1107_s10  }
  0x2b   : > { %s321_s27 = scalar_lea.sflag [#allocation3], %s320_s20  ;;  %s350_s9 = sshll.u32 %s348_s18, 4  ;;  %s351_s9 = int_to_ptr.hbm [resolvable:$true] %s350_s9 }
  0x2c   : > { %821 = dma.hbm_to_vmem [thread:$0]  (!%p819_p8), %s332_s3, 128, %s334_s26, %s321_s27  }
  0x2d   : > { %s344_s29 = scalar_lea.vmem [#allocation5], %s777_s22  ;;  %s341_s23 = scalar_lea.sflag [#allocation6], %s340_s19 }
  0x2e   : > { %s352_s17 = sshll.u32 %s344_s29, 4  ;;  %361 = sbr.rel (%p1197_p3) target bundleno = 488 (0x1e8), region = 52  ;;  %s353_s17 = int_to_ptr.vmem [resolvable:$true] %s352_s17 }
  0x2f   : > { %824 = dma.hbm_to_vmem [thread:$0]  (!%p819_p8), %s351_s9, 128, %s353_s17, %s341_s23  }
  0x30   : > { %s1258_s4 = sand.u32 (!%p1197_p3), 1, %s1091_s28  }
  0x31   : > { %s1261_s13 = sshll.u32 (!%p1197_p3), %s1258_s4, 3  ;;  %s364_s3 = scalar_lea.sflag (!%p1197_p3), [#allocation3], %s1258_s4 }
  0x32   : > { %s367_s27 = scalar_lea.vmem (!%p1197_p3), [#allocation2], %s1261_s13 }
  0x33   : > { %1066 = dma.done.wait (%p1228_p0), %s364_s3, 128  }
  0x34   : > { %1068 = vsyncadd (%p1228_p0), %s364_s3, 4294967168  ;;  %s373_s29 = sand.u32 1, %s1189_s11   ;;  %s377_s15 = scalar_lea.vmem [#allocation5], %s1261_s13 }
  0x35   : > { %s374_s9 = scalar_lea.sflag [#allocation6], %s373_s29 }
  0x36   : > { %1070 = dma.done.wait (%p1228_p0), %s374_s9, 128  }
  0x37   : > { %1072 = vsyncadd (%p1228_p0), %s374_s9, 4294967168 }
  0x38   : > { %1074 = dma.done.wait (%p91_p1), [#allocation6], 256  }
  0x39   : > { %1076 = vsyncadd (%p91_p1), [#allocation6], 4294967040 }
  0x3a   : > { %1078 = dma.done.wait (%p91_p1), [#allocation9], 256  }
  0x3b   : > { %1080 = vsyncadd (%p91_p1), [#allocation9], 4294967040  ;;  %p433_p3 = scmp.lt.s32.totalorder %s1099_s30, 1  ;;  %v441_v0 = vlaneseq  ;;  %v451_v4 = vld [vmem:[%s367_s27] sm:$0xff]  ;;  %v448_v5 = vld [vmem:[%s377_s15] sm:$0xff]  ;;  %vm455_vm1 = vcmask 64512  }
  0x3c   : > { %515 = vmatpush.msra.mxu0 %v448_v5  ;;  %v526_v12 = vld [vmem:[#allocation7 + $0x8] sm:$0xff]  ;;  %v525_v13 = vld [vmem:[#allocation7] sm:$0xff]  ;;  %v528_v14 = vld [vmem:[#allocation8 + $0x8] sm:$0xff]  ;;  %vm529_vm6 = vcmask 130048   ;;  %s794_s25 = sshll.u32 %s1099_s30, 3  ;;  %s432_s15 = scalar_lea.vmem [#allocation10], %s1261_s13 }
  0x3d   : > { %s434_s26 = scalar_select %p433_p3, %s1099_s30, 1  ;;  %v442_v1 = vshrl.u32 %v441_v0, 7  ;;  %v446_v2 = vand.u32 127, %v441_v0  ;;  %570 = vmatpush.msra.mxu2 %v526_v12  ;;  %547 = vmatpush.msra.mxu1 %v528_v14  ;;  %v527_v15 = vld [vmem:[#allocation8] sm:$0xff]  ;;  %v585_v44 = vld [vmem:[%s1353_s6 + $0x8] sm:$0xff]  ;;  %v584_v45 = vld [vmem:[%s1353_s6] sm:$0xff] }
  0x3e   : > { %607 = vmatpush.msra.mxu3 %v585_v44  ;;  %v887_v46 = vld [vmem:[%s1352_s5] ss:$0 sm:$0xff]  ;;  %s629_s29 = scalar_lea.hbm %s1355_s8, %s794_s25  ;;  %s618_s30 = scalar_lea.sflag [#allocation4], %s1258_s4 }
  0x3f   : > { %s787_s16 = sshll.u32 %s434_s26, 3  ;;  %vm447_vm0 = vcmp.ne.s32.totalorder %v442_v1, %v446_v2  ;;  %571 = vmatpush.msra.mxu2 %v525_v13  ;;  %548 = vmatpush.msra.mxu1 %v527_v15  ;;  %v888_v53 = vld [vmem:[%s1354_s7] ss:$0 sm:$0xff]  ;;  %s631_s26 = sshll.u32 %s432_s15, 4  ;;  %s632_s26 = int_to_ptr.vmem [resolvable:$true] %s631_s26 }
  0x40   : > { %s439_s19 = scalar_lea.vmem %s1347_s0, %s787_s16  ;;  %v452_v8 = vsel %vm447_vm0, %v451_v4, 0.0  ;;  %608 = vmatpush.msra.mxu3 %v584_v45  ;;  %s633_s16 = sshll.u32 %s629_s29, 4  ;;  %s634_s16 = int_to_ptr.hbm [resolvable:$true] %s633_s16 }
  0x41   : > { %v449_v3 = vld [vmem:[%s439_s19] sm:$0xff]  ;;  %v454_v10 = vand.u32 2147483647, %v452_v8  ;;  %s1027_s17 = sshra.s32 %s634_s16, 4  ;;  %s1033_s13 = scalar_lea.hbm %s1355_s8, 16  ;;  %s1028_s17 = int_to_ptr.hbm [resolvable:$true] %s1027_s17 }
  0x42   : > { %v450_v6 = vsel %vm447_vm0, %v449_v3, 0.0  ;;  %s1029_s18 = scalar_lea.hbm %s1028_s17, 8  ;;  %p1034_p11 = scmp.lt.s32.totalorder %s1028_s17, %s1355_s8 }
  0x43   : > { %v453_v7 = vand.u32 2147483647, %v450_v6  ;;  %788 = vmatmul.msk.f32.vlgmr.msra.gmra.mxu0 %vm455_vm1, %v450_v6  ;;  %v459_v11 = vsel %vm455_vm1, %v454_v10, 0.0  ;;  %p1030_p1 = scmp.ne.s32.totalorder %s1028_s17, %s1029_s18  ;;  %p1035_p12 = scmp.lt.s32.totalorder %s1033_s13, %s1029_s18 }
  0x45   : > { %v456_v9 = vsel %vm455_vm1, %v453_v7, 0.0  ;;  %p1031_p9 = pnand %p1030_p1, %p1232_p2  ;;  %p1036_p13 = por %p1035_p12, %p1034_p11 }
  0x46   : > { %457 = vadd.xlane.f32.xlu0 %v456_v9 }
  0x47   : > { %p1032_p10 = pneg %p1031_p9 }
  0x49   : > { %p1037_p0 = pnand %p1036_p13, %p1032_p10 }
  0x4b   : > { %789 = vmatmul.msk.f32.gmra.mxu0 %vm455_vm1, %v452_v8 }
  0x4e   : > { %460 = vadd.xlane.f32.xlu0 %v459_v11 }
  0xb9   : > { %v458_v16 = vpop.xlane.xlu0 %457 }
  0xba   : > { %v462_v17 = vmax.f32 %v458_v16, 1e-12 }
  0xbc   : > { %889 = vrcp.f32 %v462_v17  ;;  %v475_v23 = vand.u32 2147483648, %v462_v17  ;;  %v473_v25 = vand.u32 2147483647, %v462_v17  ;;  %vm469_vm3 = vweird.f32 %v462_v17 }
  0xbe   : > { %v476_v29 = vor.u32 1.1754944e-38, %v475_v23  ;;  %vm474_vm5 = vcmp.eq.f32.partialorder %v473_v25, 8.507059e+37 }
  0xc0   : > { %v517_v26 = vpop.f32.mrf.mxu0 }
  0xc1   : > { %v461_v18 = vpop.xlane.xlu0 %460 }
  0xc2   : > { %v890_v19 = vpop.eup %889  ;;  %v463_v20 = vmax.f32 %v461_v18, 1e-12 }
  0xc3   : > { %v465_v21 = vmul.f32 %v890_v19, %v462_v17  ;;  %vm470_vm2 = vweird.f32 %v890_v19 }
  0xc4   : > { %891 = vrcp.f32 %v463_v20  ;;  %vm471_vm4 = vmor %vm469_vm3, %vm470_vm2  ;;  %v490_v35 = vand.u32 2147483648, %v463_v20  ;;  %v488_v37 = vand.u32 2147483647, %v463_v20  ;;  %vm484_vm8 = vweird.f32 %v463_v20 }
  0xc5   : > { %v466_v22 = vsub.f32 1.0, %v465_v21 }
  0xc6   : > { %v491_v39 = vor.u32 1.1754944e-38, %v490_v35  ;;  %vm489_vm10 = vcmp.eq.f32.partialorder %v488_v37, 8.507059e+37 }
  0xc7   : > { %v467_v24 = vmul.f32 %v890_v19, %v466_v22 }
  0xc8   : > { %v520_v40 = vpop.f32.mrf.mxu0 }
  0xc9   : > { %v468_v27 = vadd.f32 %v890_v19, %v467_v24 }
  0xca   : > { %v892_v28 = vpop.eup %891 }
  0xcb   : > { %v480_v30 = vmul.f32 %v892_v28, %v463_v20  ;;  %v472_v31 = vsel %vm471_vm4, %v890_v19, %v468_v27  ;;  %vm485_vm7 = vweird.f32 %v892_v28 }
  0xcc   : > { %v477_v32 = vsel %vm474_vm5, %v476_v29, %v472_v31  ;;  %vm486_vm9 = vmor %vm484_vm8, %vm485_vm7 }
  0xcd   : > { %v523_v33 = vmul.f32 %v517_v26, %v477_v32  ;;  %v481_v34 = vsub.f32 1.0, %v480_v30 }
  0xcf   : > { %791 = vmatmul.msk.f32.vlgmr.msra.gmra.mxu2 %vm529_vm6, %v523_v33  ;;  %v482_v36 = vmul.f32 %v892_v28, %v481_v34 }
  0xd1   : > { %v483_v38 = vadd.f32 %v892_v28, %v482_v36 }
  0xd3   : > { %v487_v41 = vsel %vm486_vm9, %v892_v28, %v483_v38 }
  0xd4   : > { %v492_v42 = vsel %vm489_vm10, %v491_v39, %v487_v41 }
  0xd5   : > { %v524_v43 = vmul.f32 %v520_v40, %v492_v42 }
  0xd7   : > { %790 = vmatmul.msk.f32.vlgmr.msra.gmra.mxu1 %vm529_vm6, %v524_v43 }
 0x152   : > { %v573_v47 = vpop.f32.mrf.mxu2 }
 0x154   : > { %v550_v48 = vpop.f32.mrf.mxu1 }
 0x155   : > { %v574_v49 = vadd.f32 %v573_v47, %v550_v48 }
 0x157   : > { %v580_v50 = vadd.f32 %v887_v46, %v574_v49 }
 0x159   : > { %vm581_vm11 = vcmp.ge.f32.partialorder %v580_v50, 0.0  ;;  %v582_v51 = vmul.f32 0.01, %v580_v50 }
 0x15b   : > { %v583_v52 = vsel %vm581_vm11, %v580_v50, %v582_v51 }
 0x15c   : > { %792 = vmatmul.msk.f32.vlgmr.msra.gmra.mxu3 %vm529_vm6, %v583_v52 }
 0x1df   : > { %v610_v54 = vpop.f32.mrf.mxu3 }
 0x1e0   : > { %v611_v55 = vadd.f32 %v888_v53, %v610_v54 }
 0x1e2   : > { %vm613_vm12 = vcmp.ge.f32.partialorder %v611_v55, 0.0  ;;  %v614_v56 = vmul.f32 0.01, %v611_v55 }
 0x1e4   : > { %v615_v57 = vsel %vm613_vm12, %v611_v55, %v614_v56 }
 0x1e5   : > { %616 = vst.msk [vmem:[%s432_s15] sm:$0xff] %vm455_vm1, %v615_v57 }
 0x1e6   : > { %1040 = shalt.err (!%p1037_p0)
}
 0x1e7   : > { %809 = dma.vmem_to_hbm [thread:$0]  (%p1232_p2), %s632_s26, 128, %s634_s16, %s618_s30  }
 0x1e8 PF: > { %s1380_s4 = sld [smem:[#allocation16_spill]]  ;;  %p826_p4 = pnand %p776_p6, %p1239_p5 }
 0x1ea   : > { %p827_p7 = pneg %p826_p4 }
 0x1ee   : > { %s645_s24 = sand.u32 1, %s1380_s4  }
 0x1ef   : > { %s646_s14 = scalar_lea.sflag [#allocation4], %s645_s24 }
 0x1f0   : > { %1082 = dma.done.wait (%p827_p7), %s646_s14, 128  }
 0x1f1   : > { %1084 = vsyncadd (%p827_p7), %s646_s14, 4294967168  ;;  %s28_s10 = sadd.s32 1, %s1107_s10   ;;  %s1382_s25 = sld [smem:[#allocation17_spill]] }
 0x1f2   : > { %p25_p8 = scmp.ge.s32.totalorder %s28_s10, 4   ;;  %s1383_s29 = sld [smem:[#allocation21_spill]] }
 0x1f3   : > { %s1384_s30 = sld [smem:[#allocation18_spill]]  ;;  %s1386_s27 = smov %s1091_s28 }
 0x1f4   : > { %s1385_s9 = sld [smem:[#allocation19_spill]]  ;;  %27 = sbr.rel (!%p25_p8) target bundleno = 12 (0xc), region = 121 }
 0x1f7   : > { %s1387_s28 = smov %s1382_s25 }
 0x1f9   :  { %652 = vsyncpa [#allocation3], 1 }
 0x1fa   :  { %654 = vsyncpa [#allocation3 + $0x1], 1 }
 0x1fb   :  { %655 = vsyncpa [#allocation6], 1 }
 0x1fc   :  { %657 = vsyncpa [#allocation6 + $0x1], 1 }
 0x1fd   :  { %658 = vsyncpa [#allocation9], 1 }
 0x1fe   :  { %659 = vsyncpa [#allocation4], 1 }
 0x1ff   :  { %661 = vsyncpa [#allocation4 + $0x1], 1 }

</bundles_post_ra>
